<compile_context>
chip_gen: v5e
topology: v5e:2x2
jax: 0.10.0
libtpu: 0.0.40
codegen_flags: <defaults>
</compile_context>

<pallas_src>
import functools

import jax
import jax.numpy as jnp
from jax import lax
from jax.experimental import pallas as pl
from jax.experimental.pallas import tpu as pltpu

EPS = 1e-5
HIDDEN = 128

_FAST_PATH_MAX_BYTES = 40 * 1024 * 1024   # conservative resident-batch budget
_FAST_VMEM_LIMIT = 48 * 1024 * 1024
_STREAM_VMEM_LIMIT = 56 * 1024 * 1024     # stays under v7x's 64 MiB physical VMEM


def _round_up(n, m):
    return ((n + m - 1) // m) * m


def _pick_tile(b, target):
    """Largest batch tile <= target that divides b and is a multiple of 8."""
    if b % 8 != 0:
        return None
    t = min(target, b)
    t -= t % 8
    while t >= 8:
        if b % t == 0:
            return t
        t -= 8
    return None


# --------------------------------------------------------------------------
# Fast path: single grid step, everything VMEM-resident.
# --------------------------------------------------------------------------
def _net_t_fast_kernel(z_ref, w1_ref, gb_ref, w2_ref, w3_ref, o_ref, *, eps):
    gb = gb_ref[...]                       # rows: g1, b1, g2, b2  (4, 128) f32

    # lin1 (bf16 operands, f32 MXU accumulation)
    h1p = jnp.dot(z_ref[...], w1_ref[...], preferred_element_type=jnp.float32)

    # bn1 (full-batch, centered variance) + relu
    c1 = h1p - jnp.mean(h1p, axis=0, keepdims=True)
    var1 = jnp.mean(c1 * c1, axis=0, keepdims=True)
    h1 = jnp.maximum(c1 * (gb[0:1, :] * lax.rsqrt(var1 + eps)) + gb[1:2, :], 0.0)

    # lin2
    h2p = jnp.dot(h1.astype(jnp.bfloat16), w2_ref[...],
                  preferred_element_type=jnp.float32)

    # bn2 + relu
    c2 = h2p - jnp.mean(h2p, axis=0, keepdims=True)
    var2 = jnp.mean(c2 * c2, axis=0, keepdims=True)
    h2 = jnp.maximum(c2 * (gb[2:3, :] * lax.rsqrt(var2 + eps)) + gb[3:4, :], 0.0)

    # lin_out -> lane-dense (yn padded to 128) output store
    o_ref[...] = jnp.dot(h2.astype(jnp.bfloat16), w3_ref[...],
                         preferred_element_type=jnp.float32).astype(o_ref.dtype)


def _fast_call(zb, prep):
    B = zb.shape[0]
    xn, hidden, yn_p = prep["xn"], prep["hidden"], prep["yn_p"]
    const = lambda i: (0, 0)
    return pl.pallas_call(
        functools.partial(_net_t_fast_kernel, eps=EPS),
        out_shape=jax.ShapeDtypeStruct((B, yn_p), jnp.float32),
        grid_spec=pltpu.PrefetchScalarGridSpec(
            num_scalar_prefetch=0,
            grid=(1,),
            in_specs=[
                pl.BlockSpec((B, xn), const),          # z (bf16, unpadded K)
                pl.BlockSpec((xn, hidden), const),     # W1t
                pl.BlockSpec((4, hidden), const),      # packed gamma/beta
                pl.BlockSpec((hidden, hidden), const), # W2t
                pl.BlockSpec((hidden, yn_p), const),   # W3t (lane-padded)
            ],
            out_specs=pl.BlockSpec((B, yn_p), const),
        ),
        compiler_params=pltpu.CompilerParams(
            dimension_semantics=("arbitrary",),
            vmem_limit_bytes=_FAST_VMEM_LIMIT,
        ),
    )(zb, prep["w1"], prep["gb"], prep["w2"], prep["w3"])


# --------------------------------------------------------------------------
# Streaming path: 3 passes x batch tiles, lin1/lin2 outputs cached in VMEM.
# --------------------------------------------------------------------------
def _net_t_stream_kernel(z_ref, w1_ref, gb_ref, w2_ref, w3_ref, o_ref,
                         h1c, h2c, st, *, total_b, eps):
    """grid = (3, n_tiles), both axes sequential ("arbitrary").

    st rows: 0 sum1, 1 ssq1, 2 sum2, 3 ssq2, 4 sc1, 5 sh1, 6 sc2, 7 sh2.
    """
    p = pl.program_id(0)
    i = pl.program_id(1)
    inv_b = 1.0 / float(total_b)

    # ---- pass 0: lin1, cache it, accumulate bn1 stats ----
    @pl.when(p == 0)
    def _():
        @pl.when(i == 0)
        def _():
            st[...] = jnp.zeros(st.shape, st.dtype)
        h1p = jnp.dot(z_ref[...], w1_ref[...],
                      preferred_element_type=jnp.float32)
        h1c[i] = h1p
        st[0:1, :] += jnp.sum(h1p, axis=0, keepdims=True)
        st[1:2, :] += jnp.sum(h1p * h1p, axis=0, keepdims=True)

    # ---- fold bn1 into one scale/shift (rsqrt -> EUP) ----
    @pl.when(jnp.logical_and(p == 1, i == 0))
    def _():
        gb = gb_ref[...]
        mean1 = st[0:1, :] * inv_b
        # TODO(synk): E[x^2]-E[x]^2 can cancel when |mean| >> std; clamped >= 0.
        var1 = jnp.maximum(st[1:2, :] * inv_b - mean1 * mean1, 0.0)
        sc1 = gb[0:1, :] * lax.rsqrt(var1 + eps)
        st[4:5, :] = sc1
        st[5:6, :] = gb[1:2, :] - mean1 * sc1

    # ---- pass 1: bn1+relu from cache, lin2, cache it, bn2 stats ----
    @pl.when(p == 1)
    def _():
        h1 = jnp.maximum(h1c[i] * st[4:5, :] + st[5:6, :], 0.0)
        h2p = jnp.dot(h1.astype(jnp.bfloat16), w2_ref[...],
                      preferred_element_type=jnp.float32)
        h2c[i] = h2p
        st[2:3, :] += jnp.sum(h2p, axis=0, keepdims=True)
        st[3:4, :] += jnp.sum(h2p * h2p, axis=0, keepdims=True)

    # ---- fold bn2 ----
    @pl.when(jnp.logical_and(p == 2, i == 0))
    def _():
        gb = gb_ref[...]
        mean2 = st[2:3, :] * inv_b
        var2 = jnp.maximum(st[3:4, :] * inv_b - mean2 * mean2, 0.0)
        sc2 = gb[2:3, :] * lax.rsqrt(var2 + eps)
        st[6:7, :] = sc2
        st[7:8, :] = gb[3:4, :] - mean2 * sc2

    # ---- pass 2: bn2+relu from cache, lin_out, lane-dense store ----
    @pl.when(p == 2)
    def _():
        h2 = jnp.maximum(h2c[i] * st[6:7, :] + st[7:8, :], 0.0)
        o_ref[...] = jnp.dot(h2.astype(jnp.bfloat16), w3_ref[...],
                             preferred_element_type=jnp.float32
                             ).astype(o_ref.dtype)


def _stream_call(zb, prep, tb):
    B = zb.shape[0]
    xn, hidden, yn_p = prep["xn"], prep["hidden"], prep["yn_p"]
    n_tiles = B // tb

    # z is only consumed in pass 0; park its block at 0 afterwards (no re-DMA
    # since the block index stops changing).
    z_map = lambda p, i: (jnp.where(p == 0, i, 0), 0)
    const = lambda p, i: (0, 0)
    # Output blocks are written only in pass 2.  During passes 0/1 the output
    # block index is parked at 0; Pallas only flushes an output block when its
    # block index changes between consecutive steps, and the first change
    # happens after (p==2, i==0) has fully written block 0, so no garbage is
    # ever flushed.  (Documented assumption per review.)
    out_map = lambda p, i: (jnp.where(p == 2, i, 0), 0)

    return pl.pallas_call(
        functools.partial(_net_t_stream_kernel, total_b=B, eps=EPS),
        out_shape=jax.ShapeDtypeStruct((B, yn_p), jnp.float32),
        grid_spec=pltpu.PrefetchScalarGridSpec(
            num_scalar_prefetch=0,
            grid=(3, n_tiles),
            in_specs=[
                pl.BlockSpec((tb, xn), z_map),          # z tile (bf16)
                pl.BlockSpec((xn, hidden), const),      # W1t
                pl.BlockSpec((4, hidden), const),       # packed gamma/beta
                pl.BlockSpec((hidden, hidden), const),  # W2t
                pl.BlockSpec((hidden, yn_p), const),    # W3t
            ],
            out_specs=pl.BlockSpec((tb, yn_p), out_map),
            scratch_shapes=[
                pltpu.VMEM((n_tiles, tb, hidden), jnp.float32),  # lin1 cache
                pltpu.VMEM((n_tiles, tb, hidden), jnp.float32),  # lin2 cache
                pltpu.VMEM((8, hidden), jnp.float32),            # stats/fold
            ],
        ),
        compiler_params=pltpu.CompilerParams(
            # BN statistics carry across both grid axes -> keep them sequential.
            dimension_semantics=("arbitrary", "arbitrary"),
            vmem_limit_bytes=_STREAM_VMEM_LIMIT,
        ),
    )(zb, prep["w1"], prep["gb"], prep["w2"], prep["w3"])


# --------------------------------------------------------------------------
# Wrapper / parameter preparation
# --------------------------------------------------------------------------
def prepare_params(params):
    """One-time prep: lane-pad W3t, cast weights to bf16, pack gamma/beta."""
    w1t, g1, b1, w2t, g2, b2, w3t = params
    xn, hidden = w1t.shape
    yn = w3t.shape[1]
    yn_p = _round_up(yn, 128)
    if yn_p != yn:
        w3t = jnp.pad(w3t, ((0, 0), (0, yn_p - yn)))
    gb = jnp.concatenate(
        [g1.reshape(1, hidden), b1.reshape(1, hidden),
         g2.reshape(1, hidden), b2.reshape(1, hidden)], axis=0
    ).astype(jnp.float32)
    return dict(
        w1=w1t.astype(jnp.bfloat16),
        w2=w2t.astype(jnp.bfloat16),
        w3=w3t.astype(jnp.bfloat16),
        gb=gb,
        xn=xn, yn=yn, yn_p=yn_p, hidden=hidden,
    )


def net_t_forward(z, prep, *, batch_tile=1024, force_path=None):
    """Pallas forward of _netT (training-mode BatchNorm). z: (B, xn) float32."""
    B = z.shape[0]
    xn, yn, yn_p, hidden = prep["xn"], prep["yn"], prep["yn_p"], prep["hidden"]
    zb = z.astype(jnp.bfloat16)   # halves z HBM traffic; matmuls are bf16 anyway

    weight_bytes = (xn * hidden + hidden * hidden + hidden * yn_p) * 2 + 4 * hidden * 4
    fast_est = B * (xn * 2 + yn_p * 4 + 6 * hidden * 4) + weight_bytes

    use_fast = (force_path == "fast") or (
        force_path is None and fast_est <= _FAST_PATH_MAX_BYTES)

    if use_fast:
        out = _fast_call(zb, prep)
    else:
        tb = _pick_tile(B, batch_tile)
        if tb is None:
            # No clean tile divisor: fall back to the resident path if it fits.
            if fast_est <= _STREAM_VMEM_LIMIT:
                out = _fast_call(zb, prep)
                return out[:, :yn]
            # TODO(synk): handle awkward/huge B with a masked remainder tile.
            raise ValueError(f"B={B} has no multiple-of-8 tile divisor <= {batch_tile}")
        cache_bytes = 2 * B * hidden * 4
        if cache_bytes + 8 * 1024 * 1024 > _STREAM_VMEM_LIMIT:
            # TODO(synk): add a recompute-based (no-cache) streaming variant for
            # batches whose lin1/lin2 caches exceed VMEM.
            raise ValueError(f"B={B} too large for the cached streaming path")
        out = _stream_call(zb, prep, tb)
    return out[:, :yn]


# --------------------------------------------------------------------------
# Synthetic params + pure-JAX reference
# --------------------------------------------------------------------------
def init_params(key, xn, yn, hidden=HIDDEN):
    k1, k2, k3 = jax.random.split(key, 3)
    w1t = jax.random.normal(k1, (xn, hidden), jnp.float32) * (1.0 / jnp.sqrt(xn))
    w2t = jax.random.normal(k2, (hidden, hidden), jnp.float32) * (1.0 / jnp.sqrt(hidden))
    w3t = jax.random.normal(k3, (hidden, yn), jnp.float32) * (1.0 / jnp.sqrt(hidden))
    g1 = jnp.ones((1, hidden), jnp.float32)
    b1 = jnp.zeros((1, hidden), jnp.float32)
    g2 = jnp.ones((1, hidden), jnp.float32)
    b2 = jnp.zeros((1, hidden), jnp.float32)
    return (w1t, g1, b1, w2t, g2, b2, w3t)


def reference_forward(z, params, use_bf16_matmuls=False):
    """Pure-JAX reference (training-mode BN). bf16 flag mirrors kernel numerics."""
    w1t, g1, b1, w2t, g2, b2, w3t = params

    def mm(a, w):
        if use_bf16_matmuls:
            a = a.astype(jnp.bfloat16)
            w = w.astype(jnp.bfloat16)
        return jnp.dot(a, w, preferred_element_type=jnp.float32)

    def bn(h, g, b):
        mean = jnp.mean(h, axis=0, keepdims=True)
        c = h - mean
        var = jnp.mean(c * c, axis=0, keepdims=True)
        return c * (g * lax.rsqrt(var + EPS)) + b

    h = jnp.maximum(bn(mm(z, w1t), g1, b1), 0.0)
    h = jnp.maximum(bn(mm(h, w2t), g2, b2), 0.0)
    return mm(h, w3t)


if __name__ == "__main__":
    B, xn, yn = 256, 32, 16
    key = jax.random.PRNGKey(0)
    kz, kp = jax.random.split(key)

    z = jax.random.normal(kz, (B, xn), jnp.float32)
    params = init_params(kp, xn, yn)
    prep = prepare_params(params)   # one-time weight cast/pad + gamma/beta pack

    # Fast path (single grid step, fully VMEM-resident).
    out = net_t_forward(z, prep)
    out = jax.block_until_ready(out)
    assert out.shape == (B, yn)

    # Numerics-matched reference (bf16 matmul operands, f32 accumulation).
    ref_bf16 = reference_forward(z, params, use_bf16_matmuls=True)
    assert jnp.allclose(out, ref_bf16, atol=2e-2, rtol=2e-2), "mismatch vs bf16 ref"

    # Loose sanity check against exact f32 module semantics.
    ref_f32 = reference_forward(z, params, use_bf16_matmuls=False)
    assert float(jnp.max(jnp.abs(out - ref_f32))) < 0.25, "diverged from f32 reference"

    # Exercise the large-B streaming path (cached intermediates) on the same data.
    out_stream = net_t_forward(z, prep, batch_tile=64, force_path="stream")
    out_stream = jax.block_until_ready(out_stream)
    assert jnp.allclose(out_stream, out, atol=2e-2, rtol=2e-2), "stream/fast mismatch"

    print("KERNEL_OK")
</pallas_src>

<mosaic_0001>
module attributes {stable_mosaic.version = 11 : i64} {
  func.func @_net_t_fast_kernel(%arg0: i32, %arg1: memref<256x32xbf16, #tpu.memory_space<vmem>>, %arg2: memref<32x128xbf16, #tpu.memory_space<vmem>>, %arg3: memref<4x128xf32, #tpu.memory_space<vmem>>, %arg4: memref<128x128xbf16, #tpu.memory_space<vmem>>, %arg5: memref<128x128xbf16, #tpu.memory_space<vmem>>, %arg6: memref<256x128xf32, #tpu.memory_space<vmem>>) attributes {dimension_semantics = [#tpu.dimension_semantics<arbitrary>], iteration_bounds = array<i64: 1>, scalar_prefetch = 0 : i64, scratch_operands = 0 : i64, tpu.core_type = #tpu.core_type<tc>, window_params = [{pipeline_mode = #tpu.pipeline_mode<synchronous>, transform_indices = @transform_0, window_bounds = array<i64: 256, 32>}, {pipeline_mode = #tpu.pipeline_mode<synchronous>, transform_indices = @transform_1, window_bounds = array<i64: 32, 128>}, {pipeline_mode = #tpu.pipeline_mode<synchronous>, transform_indices = @transform_2, window_bounds = array<i64: 4, 128>}, {pipeline_mode = #tpu.pipeline_mode<synchronous>, transform_indices = @transform_3, window_bounds = array<i64: 128, 128>}, {pipeline_mode = #tpu.pipeline_mode<synchronous>, transform_indices = @transform_4, window_bounds = array<i64: 128, 128>}, {pipeline_mode = #tpu.pipeline_mode<synchronous>, transform_indices = @transform_5, window_bounds = array<i64: 256, 128>}]} {
    %c0 = arith.constant 0 : index
    %c0_0 = arith.constant 0 : index
    %0 = vector.load %arg3[%c0, %c0_0] : memref<4x128xf32, #tpu.memory_space<vmem>>, vector<4x128xf32>
    %c0_1 = arith.constant 0 : index
    %c0_2 = arith.constant 0 : index
    %1 = vector.load %arg1[%c0_1, %c0_2] : memref<256x32xbf16, #tpu.memory_space<vmem>>, vector<256x32xbf16>
    %c0_3 = arith.constant 0 : index
    %c0_4 = arith.constant 0 : index
    %2 = vector.load %arg2[%c0_3, %c0_4] : memref<32x128xbf16, #tpu.memory_space<vmem>>, vector<32x128xbf16>
    %cst = arith.constant dense<0.000000e+00> : vector<256x128xf32>
    %3 = tpu.matmul %1, %2, %cst {dimension_numbers = #tpu.dot_dimension_numbers<[1], [0], [0], [1], [0, 0, 1, 1], [], []>} : vector<256x32xbf16>, vector<32x128xbf16>, vector<256x128xf32> -> vector<256x128xf32>
    %cst_5 = arith.constant dense<0.000000e+00> : vector<128xf32>
    %4 = vector.multi_reduction <add>, %3, %cst_5 [0] : vector<256x128xf32> to vector<128xf32>
    %5 = vector.shape_cast %4 : vector<128xf32> to vector<1x128xf32>
    %cst_6 = arith.constant 2.560000e+02 : f32
    %6 = vector.broadcast %cst_6 : f32 to vector<1x128xf32>
    %7 = arith.divf %5, %6 : vector<1x128xf32>
    %8 = vector.broadcast %7 : vector<1x128xf32> to vector<256x128xf32>
    %9 = arith.subf %3, %8 : vector<256x128xf32>
    %10 = arith.mulf %9, %9 : vector<256x128xf32>
    %cst_7 = arith.constant dense<0.000000e+00> : vector<128xf32>
    %11 = vector.multi_reduction <add>, %10, %cst_7 [0] : vector<256x128xf32> to vector<128xf32>
    %12 = vector.shape_cast %11 : vector<128xf32> to vector<1x128xf32>
    %cst_8 = arith.constant 2.560000e+02 : f32
    %13 = vector.broadcast %cst_8 : f32 to vector<1x128xf32>
    %14 = arith.divf %12, %13 : vector<1x128xf32>
    %15 = vector.extract_strided_slice %0 {offsets = [0, 0], sizes = [1, 128], strides = [1, 1]} : vector<4x128xf32> to vector<1x128xf32>
    %cst_9 = arith.constant 9.99999974E-6 : f32
    %16 = vector.broadcast %cst_9 : f32 to vector<1x128xf32>
    %17 = arith.addf %14, %16 : vector<1x128xf32>
    %18 = math.rsqrt %17 : vector<1x128xf32>
    %19 = arith.mulf %15, %18 : vector<1x128xf32>
    %20 = vector.broadcast %19 : vector<1x128xf32> to vector<256x128xf32>
    %21 = arith.mulf %9, %20 : vector<256x128xf32>
    %22 = vector.extract_strided_slice %0 {offsets = [1, 0], sizes = [1, 128], strides = [1, 1]} : vector<4x128xf32> to vector<1x128xf32>
    %23 = vector.broadcast %22 : vector<1x128xf32> to vector<256x128xf32>
    %24 = arith.addf %21, %23 : vector<256x128xf32>
    %cst_10 = arith.constant 0.000000e+00 : f32
    %25 = vector.broadcast %cst_10 : f32 to vector<256x128xf32>
    %26 = arith.maximumf %24, %25 : vector<256x128xf32>
    %27 = arith.truncf %26 : vector<256x128xf32> to vector<256x128xbf16>
    %c0_11 = arith.constant 0 : index
    %c0_12 = arith.constant 0 : index
    %28 = vector.load %arg4[%c0_11, %c0_12] : memref<128x128xbf16, #tpu.memory_space<vmem>>, vector<128x128xbf16>
    %cst_13 = arith.constant dense<0.000000e+00> : vector<256x128xf32>
    %29 = tpu.matmul %27, %28, %cst_13 {dimension_numbers = #tpu.dot_dimension_numbers<[1], [0], [0], [1], [0, 0, 1, 1], [], []>} : vector<256x128xbf16>, vector<128x128xbf16>, vector<256x128xf32> -> vector<256x128xf32>
    %cst_14 = arith.constant dense<0.000000e+00> : vector<128xf32>
    %30 = vector.multi_reduction <add>, %29, %cst_14 [0] : vector<256x128xf32> to vector<128xf32>
    %31 = vector.shape_cast %30 : vector<128xf32> to vector<1x128xf32>
    %cst_15 = arith.constant 2.560000e+02 : f32
    %32 = vector.broadcast %cst_15 : f32 to vector<1x128xf32>
    %33 = arith.divf %31, %32 : vector<1x128xf32>
    %34 = vector.broadcast %33 : vector<1x128xf32> to vector<256x128xf32>
    %35 = arith.subf %29, %34 : vector<256x128xf32>
    %36 = arith.mulf %35, %35 : vector<256x128xf32>
    %cst_16 = arith.constant dense<0.000000e+00> : vector<128xf32>
    %37 = vector.multi_reduction <add>, %36, %cst_16 [0] : vector<256x128xf32> to vector<128xf32>
    %38 = vector.shape_cast %37 : vector<128xf32> to vector<1x128xf32>
    %cst_17 = arith.constant 2.560000e+02 : f32
    %39 = vector.broadcast %cst_17 : f32 to vector<1x128xf32>
    %40 = arith.divf %38, %39 : vector<1x128xf32>
    %41 = vector.extract_strided_slice %0 {offsets = [2, 0], sizes = [1, 128], strides = [1, 1]} : vector<4x128xf32> to vector<1x128xf32>
    %cst_18 = arith.constant 9.99999974E-6 : f32
    %42 = vector.broadcast %cst_18 : f32 to vector<1x128xf32>
    %43 = arith.addf %40, %42 : vector<1x128xf32>
    %44 = math.rsqrt %43 : vector<1x128xf32>
    %45 = arith.mulf %41, %44 : vector<1x128xf32>
    %46 = vector.broadcast %45 : vector<1x128xf32> to vector<256x128xf32>
    %47 = arith.mulf %35, %46 : vector<256x128xf32>
    %48 = vector.extract_strided_slice %0 {offsets = [3, 0], sizes = [1, 128], strides = [1, 1]} : vector<4x128xf32> to vector<1x128xf32>
    %49 = vector.broadcast %48 : vector<1x128xf32> to vector<256x128xf32>
    %50 = arith.addf %47, %49 : vector<256x128xf32>
    %cst_19 = arith.constant 0.000000e+00 : f32
    %51 = vector.broadcast %cst_19 : f32 to vector<256x128xf32>
    %52 = arith.maximumf %50, %51 : vector<256x128xf32>
    %53 = arith.truncf %52 : vector<256x128xf32> to vector<256x128xbf16>
    %c0_20 = arith.constant 0 : index
    %c0_21 = arith.constant 0 : index
    %54 = vector.load %arg5[%c0_20, %c0_21] : memref<128x128xbf16, #tpu.memory_space<vmem>>, vector<128x128xbf16>
    %cst_22 = arith.constant dense<0.000000e+00> : vector<256x128xf32>
    %55 = tpu.matmul %53, %54, %cst_22 {dimension_numbers = #tpu.dot_dimension_numbers<[1], [0], [0], [1], [0, 0, 1, 1], [], []>} : vector<256x128xbf16>, vector<128x128xbf16>, vector<256x128xf32> -> vector<256x128xf32>
    %c0_23 = arith.constant 0 : index
    %c0_24 = arith.constant 0 : index
    %56 = vector.load %arg6[%c0_23, %c0_24] : memref<256x128xf32, #tpu.memory_space<vmem>>, vector<256x128xf32>
    tpu.vector_store %arg6[%c0_23, %c0_24], %55 {strides = array<i32>} : memref<256x128xf32, #tpu.memory_space<vmem>>, vector<256x128xf32>,
    return
  }
  func.func @transform_0(%arg0: i32) -> (i32, i32) {
    %c0_i32 = arith.constant 0 : i32
    %c0_i32_0 = arith.constant 0 : i32
    %c0_i32_1 = arith.constant 0 : i32
    return %c0_i32, %c0_i32_0 : i32, i32
  }
  func.func @transform_1(%arg0: i32) -> (i32, i32) {
    %c0_i32 = arith.constant 0 : i32
    %c0_i32_0 = arith.constant 0 : i32
    %c0_i32_1 = arith.constant 0 : i32
    return %c0_i32, %c0_i32_0 : i32, i32
  }
  func.func @transform_2(%arg0: i32) -> (i32, i32) {
    %c0_i32 = arith.constant 0 : i32
    %c0_i32_0 = arith.constant 0 : i32
    %c0_i32_1 = arith.constant 0 : i32
    return %c0_i32, %c0_i32_0 : i32, i32
  }
  func.func @transform_3(%arg0: i32) -> (i32, i32) {
    %c0_i32 = arith.constant 0 : i32
    %c0_i32_0 = arith.constant 0 : i32
    %c0_i32_1 = arith.constant 0 : i32
    return %c0_i32, %c0_i32_0 : i32, i32
  }
  func.func @transform_4(%arg0: i32) -> (i32, i32) {
    %c0_i32 = arith.constant 0 : i32
    %c0_i32_0 = arith.constant 0 : i32
    %c0_i32_1 = arith.constant 0 : i32
    return %c0_i32, %c0_i32_0 : i32, i32
  }
  func.func @transform_5(%arg0: i32) -> (i32, i32) {
    %c0_i32 = arith.constant 0 : i32
    %c0_i32_0 = arith.constant 0 : i32
    %c0_i32_1 = arith.constant 0 : i32
    return %c0_i32, %c0_i32_0 : i32, i32
  }
}

</mosaic_0001>

<bundles_post_ra>
// kernel: tpu_custom_call.1
= control target key start
LH: loop header
LB: loop body
LE: loop exit
PB: predicated region body
PF: predicated region fallthrough
CT: control target
= control target key end

     0   :  { %s2383_s0 = inlined_call_operand.vmem [shape: bf16[256,32], index: 0, kind: input, shape index: {}]   ;;  %s2384_s1 = inlined_call_operand.vmem [shape: bf16[32,128], index: 1, kind: input, shape index: {}]   ;;  %s2385_s2 = inlined_call_operand.vmem [shape: f32[4,128], index: 2, kind: input, shape index: {}]   ;;  %s2386_s3 = inlined_call_operand.vmem [shape: bf16[128,128], index: 3, kind: input, shape index: {}]   ;;  %s2387_s4 = inlined_call_operand.vmem [shape: bf16[128,128], index: 4, kind: input, shape index: {}]   ;;  %s2388_s5 = inlined_call_operand.hbm [shape: f32[256,128], index: 5, kind: output, shape index: {}]  }
   0x1   :  { %v1353_v0 = vld [vmem:[%s2384_s1 + $0x8] sm:$0xff] }
   0x2   :  { %10 = vsyncpa [#allocation3], 0  ;;  %206 = vmatpush.bf16.msra.mxu0 %v1353_v0  ;;  %v1352_v1 = vld [vmem:[%s2384_s1] sm:$0xff]  ;;  %1370 = vmatpush.bf16.msra.mxu3 %v1353_v0  ;;  %vm151_vm0 = vcmask 261120   ;;  %v1337_v3 = vld [vmem:[%s2383_s0 + $0x8] sm:$0xff]  ;;  %s1172_s9 = sshll.u32 %s2388_s5, 4  ;;  %s1173_s9 = int_to_ptr.hbm [resolvable:$true] %s1172_s9 }
   0x3   :  { %v1336_v2 = vld [vmem:[%s2383_s0] sm:$0xff]  ;;  %v1338_v4 = vld [vmem:[%s2383_s0 + $0x10] sm:$0xff]  ;;  %v1339_v5 = vld [vmem:[%s2383_s0 + $0x18] sm:$0xff]  ;;  %s1426_s10 = smov 128   ;;  %s1427_s11 = smov 8  }
   0x4   :  { %v1340_v6 = vld [vmem:[%s2383_s0 + $0x20] sm:$0xff]  ;;  %v1341_v7 = vld [vmem:[%s2383_s0 + $0x28] sm:$0xff]  ;;  %v1342_v8 = vld [vmem:[%s2383_s0 + $0x30] sm:$0xff] }
   0x5   :  { %v1343_v9 = vld [vmem:[%s2383_s0 + $0x38] sm:$0xff]  ;;  %v1344_v10 = vld [vmem:[%s2383_s0 + $0x40] sm:$0xff]  ;;  %v1349_v11 = vld [vmem:[%s2383_s0 + $0x68] sm:$0xff] }
   0x6   :  { %207 = vmatpush.bf16.msra.mxu0 %v1352_v1  ;;  %1371 = vmatpush.bf16.msra.mxu3 %v1352_v1  ;;  %v1345_v14 = vld [vmem:[%s2383_s0 + $0x48] sm:$0xff]  ;;  %v1350_v15 = vld [vmem:[%s2383_s0 + $0x70] sm:$0xff]  ;;  %v1351_v19 = vld [vmem:[%s2383_s0 + $0x78] sm:$0xff] }
   0x7   :  { %v1346_v18 = vld [vmem:[%s2383_s0 + $0x50] sm:$0xff]  ;;  %v1347_v22 = vld [vmem:[%s2383_s0 + $0x58] sm:$0xff]  ;;  %v1348_v25 = vld [vmem:[%s2383_s0 + $0x60] sm:$0xff] }
   0x9   :  { %1256 = vmatmul.msk.bf16.vlgmr.msra.gmra.mxu0 %vm151_vm0, %v1336_v2  ;;  %1269 = vmatmul.msk.bf16.vlgmr.msra.gmra.mxu3 %vm151_vm0, %v1349_v11 }
  0x19   :  { %1257 = vmatmul.msk.bf16.gmra.mxu0 %vm151_vm0, %v1337_v3  ;;  %1270 = vmatmul.msk.bf16.gmra.mxu3 %vm151_vm0, %v1350_v15 }
  0x29   :  { %1258 = vmatmul.msk.bf16.gmra.mxu0 %vm151_vm0, %v1338_v4  ;;  %1271 = vmatmul.msk.bf16.gmra.mxu3 %vm151_vm0, %v1351_v19 }
  0x39   :  { %1259 = vmatmul.msk.bf16.gmra.mxu0 %vm151_vm0, %v1339_v5 }
  0x49   :  { %1260 = vmatmul.msk.bf16.gmra.mxu0 %vm151_vm0, %v1340_v6 }
  0x59   :  { %1261 = vmatmul.msk.bf16.gmra.mxu0 %vm151_vm0, %v1341_v7 }
  0x69   :  { %1262 = vmatmul.msk.bf16.gmra.mxu0 %vm151_vm0, %v1342_v8 }
  0x79   :  { %1263 = vmatmul.msk.bf16.gmra.mxu0 %vm151_vm0, %v1343_v9 }
  0x86   :  { %v1502_v12 = vpop.f32.mrf.mxu0 }
  0x89   :  { %1264 = vmatmul.msk.bf16.gmra.mxu0 %vm151_vm0, %v1344_v10 }
  0x8c   :  { %v1576_v44 = vpop.f32.mrf.mxu3 }
  0x8e   :  { %v1506_v13 = vpop.f32.mrf.mxu0 }
  0x8f   :  { %v289_v38 = vadd.f32 %v1506_v13, %v1502_v12 }
  0x94   :  { %v1585_v51 = vpop.f32.mrf.mxu3 }
  0x96   :  { %v1514_v16 = vpop.f32.mrf.mxu0 }
  0x97   :  { %v290_v39 = vadd.f32 %v289_v38, %v1514_v16 }
  0x99   :  { %1265 = vmatmul.msk.bf16.gmra.mxu0 %vm151_vm0, %v1345_v14  ;;  %v1424_v14 = vmov 256.0  }
  0x9a   :  { %1392 = vrcp.f32 %v1424_v14 }
  0x9c   :  { %v1594_v58 = vpop.f32.mrf.mxu3 }
  0x9e   :  { %v1518_v17 = vpop.f32.mrf.mxu0 }
  0x9f   :  { %v291_v40 = vadd.f32 %v290_v39, %v1518_v17 }
  0xa0   :  { %v1393_v19 = vpop.eup %1392 }
  0xa1   :  { %v327_v39 = vmul.f32 256.0, %v1393_v19  ;;  %vm331_vm1 = vweird.f32 %v1393_v19 }
  0xa4   :  { %v1603_v1 = vpop.f32.mrf.mxu3 }
  0xa6   :  { %v1526_v20 = vpop.f32.mrf.mxu0 }
  0xa7   :  { %v292_v41 = vadd.f32 %v291_v40, %v1526_v20 }
  0xa9   :  { %1266 = vmatmul.msk.bf16.gmra.mxu0 %vm151_vm0, %v1346_v18 }
  0xac   :  { %v1614_v9 = vpop.f32.mrf.mxu3 }
  0xae   :  { %v1530_v21 = vpop.f32.mrf.mxu0 }
  0xaf   :  { %v293_v43 = vadd.f32 %v292_v41, %v1530_v21 }
  0xb6   :  { %v1535_v23 = vpop.f32.mrf.mxu0 }
  0xb7   :  { %v294_v45 = vadd.f32 %v293_v43, %v1535_v23  ;;  %v328_v43 = vsub.f32 1.0, %v327_v39 }
  0xb9   :  { %1267 = vmatmul.msk.bf16.gmra.mxu0 %vm151_vm0, %v1347_v22 }
  0xbe   :  { %v1538_v24 = vpop.f32.mrf.mxu0 }
  0xbf   :  { %v295_v46 = vadd.f32 %v294_v45, %v1538_v24 }
  0xc6   :  { %v1543_v26 = vpop.f32.mrf.mxu0 }
  0xc7   :  { %v296_v47 = vadd.f32 %v295_v46, %v1543_v26 }
  0xc9   :  { %1268 = vmatmul.msk.bf16.gmra.mxu0 %vm151_vm0, %v1348_v25  ;;  %v1621_v25 = vpop.f32.mrf.mxu3 }
  0xce   :  { %v1546_v27 = vpop.f32.mrf.mxu0 }
  0xcf   :  { %v297_v49 = vadd.f32 %v296_v47, %v1546_v27  ;;  %v329_v47 = vmul.f32 %v1393_v19, %v328_v43 }
  0xd6   :  { %v1548_v28 = vpop.f32.mrf.mxu0 }
  0xd7   :  { %v298_v50 = vadd.f32 %v297_v49, %v1548_v28 }
  0xde   :  { %v1550_v29 = vpop.f32.mrf.mxu0 }
  0xdf   :  { %v299_v52 = vadd.f32 %v298_v50, %v1550_v29  ;;  %v330_v50 = vadd.f32 %v1393_v19, %v329_v47 }
  0xe6   :  { %v1552_v30 = vpop.f32.mrf.mxu0 }
  0xe7   :  { %v300_v53 = vadd.f32 %v299_v52, %v1552_v30 }
  0xee   :  { %v1554_v31 = vpop.f32.mrf.mxu0 }
  0xef   :  { %v301_v55 = vadd.f32 %v300_v53, %v1554_v31  ;;  %v1624_v53 = vsel %vm331_vm1, %v1393_v19, %v330_v50 }
  0xf6   :  { %v1556_v32 = vpop.f32.mrf.mxu0 }
  0xf7   :  { %v302_v56 = vadd.f32 %v301_v55, %v1556_v32 }
  0xfe   :  { %v1558_v33 = vpop.f32.mrf.mxu0 }
  0xff   :  { %v303_v57 = vadd.f32 %v302_v56, %v1558_v33 }
 0x106   :  { %v1560_v34 = vpop.f32.mrf.mxu0 }
 0x107   :  { %v304_v59 = vadd.f32 %v303_v57, %v1560_v34 }
 0x10e   :  { %v1562_v35 = vpop.f32.mrf.mxu0 }
 0x10f   :  { %v305_v61 = vadd.f32 %v304_v59, %v1562_v35 }
 0x116   :  { %v1564_v36 = vpop.f32.mrf.mxu0 }
 0x117   :  { %v306_v62 = vadd.f32 %v305_v61, %v1564_v36 }
 0x11e   :  { %v1566_v37 = vpop.f32.mrf.mxu0 }
 0x11f   :  { %v307_v63 = vadd.f32 %v306_v62, %v1566_v37 }
 0x126   :  { %v1573_v42 = vpop.f32.mrf.mxu0 }
 0x127   :  { %v308_v0 = vadd.f32 %v307_v63, %v1573_v42 }
 0x12e   :  { %v1581_v48 = vpop.f32.mrf.mxu0 }
 0x12f   :  { %v309_v3 = vadd.f32 %v308_v0, %v1581_v48 }
 0x136   :  { %v1589_v54 = vpop.f32.mrf.mxu0 }
 0x137   :  { %v310_v4 = vadd.f32 %v309_v3, %v1589_v54 }
 0x13e   :  { %v1597_v60 = vpop.f32.mrf.mxu0 }
 0x13f   :  { %v311_v5 = vadd.f32 %v310_v4, %v1597_v60 }
 0x146   :  { %v1605_v2 = vpop.f32.mrf.mxu0 }
 0x147   :  { %v312_v6 = vadd.f32 %v311_v5, %v1605_v2 }
 0x14e   :  { %v1611_v7 = vpop.f32.mrf.mxu0 }
 0x14f   :  { %v313_v8 = vadd.f32 %v312_v6, %v1611_v7 }
 0x151   :  { %v314_v10 = vadd.f32 %v313_v8, %v1576_v44 }
 0x153   :  { %v315_v11 = vadd.f32 %v314_v10, %v1585_v51 }
 0x155   :  { %v316_v15 = vadd.f32 %v315_v11, %v1594_v58 }
 0x157   :  { %v317_v18 = vadd.f32 %v316_v15, %v1603_v1 }
 0x159   :  { %v318_v22 = vadd.f32 %v317_v18, %v1614_v9 }
 0x15b   :  { %v319_v38 = vadd.f32 %v318_v22, %v1621_v25 }
 0x15d   :  { %v320_v40 = vrot.slane %v319_v38, 4 }
 0x15f   :  { %v321_v41 = vadd.f32 %v320_v40, %v319_v38 }
 0x161   :  { %v322_v45 = vrot.slane %v321_v41, 2 }
 0x163   :  { %v323_v46 = vadd.f32 %v322_v45, %v321_v41 }
 0x165   :  { %v324_v49 = vrot.slane %v323_v46, 1 }
 0x167   :  { %v325_v52 = vadd.f32 %v324_v49, %v323_v46 }
 0x169   :  { %v1627_v55 = vmul.f32 %v1624_v53, %v325_v52 }
 0x16b   :  { %v1631_v56 = vsub.f32 %v1502_v12, %v1627_v55  ;;  %v1635_v57 = vsub.f32 %v1506_v13, %v1627_v55  ;;  %v1639_v59 = vsub.f32 %v1514_v16, %v1627_v55  ;;  %v1647_v63 = vsub.f32 %v1518_v17, %v1627_v55 }
 0x16c   :  { %v1651_v12 = vsub.f32 %v1526_v20, %v1627_v55  ;;  %v1657_v16 = vsub.f32 %v1530_v21, %v1627_v55  ;;  %v1663_v17 = vsub.f32 %v1535_v23, %v1627_v55  ;;  %v1669_v6 = vsub.f32 %v1538_v24, %v1627_v55 }
 0x16d   :  { %v366_v61 = vmul.f32 %v1631_v56, %v1631_v56  ;;  %v367_v62 = vmul.f32 %v1635_v57, %v1635_v57  ;;  %v368_v13 = vmul.f32 %v1639_v59, %v1639_v59  ;;  %v369_v3 = vmul.f32 %v1647_v63, %v1647_v63 }
 0x16e   :  { %v370_v20 = vmul.f32 %v1651_v12, %v1651_v12  ;;  %v371_v21 = vmul.f32 %v1657_v16, %v1657_v16  ;;  %v1675_v10 = vsub.f32 %v1543_v26, %v1627_v55  ;;  %v372_v23 = vmul.f32 %v1663_v17, %v1663_v17 }
 0x16f   :  { %v398_v0 = vadd.f32 %v367_v62, %v366_v61  ;;  %v1681_v14 = vsub.f32 %v1546_v27, %v1627_v55  ;;  %v373_v24 = vmul.f32 %v1669_v6, %v1669_v6  ;;  %v1687_v18 = vsub.f32 %v1548_v28, %v1627_v55 }
 0x170   :  { %v374_v26 = vmul.f32 %v1675_v10, %v1675_v10  ;;  %v1693_v22 = vsub.f32 %v1550_v29, %v1627_v55  ;;  %v1699_v39 = vsub.f32 %v1552_v30, %v1627_v55  ;;  %v1705_v41 = vsub.f32 %v1554_v31, %v1627_v55 }
 0x171   :  { %v399_v4 = vadd.f32 %v398_v0, %v368_v13  ;;  %v375_v27 = vmul.f32 %v1681_v14, %v1681_v14  ;;  %v376_v28 = vmul.f32 %v1687_v18, %v1687_v18  ;;  %v1711_v45 = vsub.f32 %v1556_v32, %v1627_v55 }
 0x172   :  { %v377_v29 = vmul.f32 %v1693_v22, %v1693_v22  ;;  %v378_v30 = vmul.f32 %v1699_v39, %v1699_v39  ;;  %v1717_v47 = vsub.f32 %v1558_v33, %v1627_v55  ;;  %v379_v31 = vmul.f32 %v1705_v41, %v1705_v41 }
 0x173   :  { %v400_v5 = vadd.f32 %v399_v4, %v369_v3  ;;  %v1723_v50 = vsub.f32 %v1560_v34, %v1627_v55  ;;  %v380_v32 = vmul.f32 %v1711_v45, %v1711_v45  ;;  %v1729_v61 = vsub.f32 %v1562_v35, %v1627_v55 }
 0x174   :  { %v381_v33 = vmul.f32 %v1717_v47, %v1717_v47  ;;  %v1735_v13 = vsub.f32 %v1564_v36, %v1627_v55  ;;  %v1741_v3 = vsub.f32 %v1566_v37, %v1627_v55 }
 0x175   :  { %v401_v8 = vadd.f32 %v400_v5, %v370_v20  ;;  %v382_v34 = vmul.f32 %v1723_v50, %v1723_v50  ;;  %v383_v35 = vmul.f32 %v1729_v61, %v1729_v61  ;;  %v1747_v20 = vsub.f32 %v1573_v42, %v1627_v55 }
 0x176   :  { %v384_v36 = vmul.f32 %v1735_v13, %v1735_v13  ;;  %v385_v37 = vmul.f32 %v1741_v3, %v1741_v3 }
 0x177   :  { %v402_v11 = vadd.f32 %v401_v8, %v371_v21  ;;  %v1753_v21 = vsub.f32 %v1581_v48, %v1627_v55  ;;  %v386_v42 = vmul.f32 %v1747_v20, %v1747_v20 }
 0x179   :  { %v403_v15 = vadd.f32 %v402_v11, %v372_v23  ;;  %v1759_v23 = vsub.f32 %v1589_v54, %v1627_v55  ;;  %v387_v48 = vmul.f32 %v1753_v21, %v1753_v21 }
 0x17b   :  { %v404_v19 = vadd.f32 %v403_v15, %v373_v24  ;;  %v1765_v24 = vsub.f32 %v1597_v60, %v1627_v55  ;;  %v388_v54 = vmul.f32 %v1759_v23, %v1759_v23 }
 0x17d   :  { %v405_v38 = vadd.f32 %v404_v19, %v374_v26  ;;  %v1771_v26 = vsub.f32 %v1605_v2, %v1627_v55  ;;  %v389_v60 = vmul.f32 %v1765_v24, %v1765_v24 }
 0x17f   :  { %v406_v40 = vadd.f32 %v405_v38, %v375_v27  ;;  %v1777_v27 = vsub.f32 %v1611_v7, %v1627_v55  ;;  %v390_v2 = vmul.f32 %v1771_v26, %v1771_v26 }
 0x181   :  { %v407_v43 = vadd.f32 %v406_v40, %v376_v28  ;;  %v1783_v28 = vsub.f32 %v1576_v44, %v1627_v55  ;;  %v391_v7 = vmul.f32 %v1777_v27, %v1777_v27 }
 0x183   :  { %v408_v46 = vadd.f32 %v407_v43, %v377_v29  ;;  %v1789_v29 = vsub.f32 %v1585_v51, %v1627_v55  ;;  %v392_v44 = vmul.f32 %v1783_v28, %v1783_v28 }
 0x185   :  { %v409_v49 = vadd.f32 %v408_v46, %v378_v30  ;;  %v1795_v30 = vsub.f32 %v1594_v58, %v1627_v55  ;;  %v393_v51 = vmul.f32 %v1789_v29, %v1789_v29  ;;  %v1810_v58 = vsub.f32 %v1614_v9, %v1627_v55 }
 0x187   :  { %v410_v52 = vadd.f32 %v409_v49, %v379_v31  ;;  %v1801_v31 = vsub.f32 %v1603_v1, %v1627_v55  ;;  %v1816_v1 = vsub.f32 %v1621_v25, %v1627_v55  ;;  %v396_v9 = vmul.f32 %v1810_v58, %v1810_v58  ;;  %v1359_v25 = vld [vmem:[%s2386_s3 + $0x28] sm:$0xff] }
 0x189   :  { %v411_v62 = vadd.f32 %v410_v52, %v380_v32  ;;  %v1361_v32 = vld [vmem:[%s2386_s3 + $0x38] sm:$0xff]  ;;  %v394_v52 = vmul.f32 %v1795_v30, %v1795_v30 }
 0x18a   :  { %626 = vmatpush.bf16.msra.mxu1 %v1361_v32  ;;  %1372 = vmatpush.bf16.msrb.mxu3 %v1361_v32 }
 0x18b   :  { %v412_v0 = vadd.f32 %v411_v62, %v381_v33  ;;  %v395_v62 = vmul.f32 %v1801_v31, %v1801_v31 }
 0x18d   :  { %v413_v4 = vadd.f32 %v412_v0, %v382_v34  ;;  %v1360_v0 = vld [vmem:[%s2386_s3 + $0x30] sm:$0xff] }
 0x18e   :  { %627 = vmatpush.bf16.msra.mxu1 %v1360_v0  ;;  %1373 = vmatpush.bf16.msrb.mxu3 %v1360_v0 }
 0x18f   :  { %v414_v5 = vadd.f32 %v413_v4, %v383_v35  ;;  %v397_v4 = vmul.f32 %v1816_v1, %v1816_v1 }
 0x191   :  { %v415_v8 = vadd.f32 %v414_v5, %v384_v36 }
 0x192   :  { %628 = vmatpush.bf16.msra.mxu1 %v1359_v25  ;;  %1374 = vmatpush.bf16.msrb.mxu3 %v1359_v25 }
 0x193   :  { %v416_v11 = vadd.f32 %v415_v8, %v385_v37  ;;  %v1358_v37 = vld [vmem:[%s2386_s3 + $0x20] sm:$0xff] }
 0x195   :  { %v417_v15 = vadd.f32 %v416_v11, %v386_v42  ;;  %v1357_v11 = vld [vmem:[%s2386_s3 + $0x18] sm:$0xff] }
 0x196   :  { %629 = vmatpush.bf16.msra.mxu1 %v1358_v37  ;;  %1375 = vmatpush.bf16.msrb.mxu3 %v1358_v37 }
 0x197   :  { %v418_v19 = vadd.f32 %v417_v15, %v387_v48 }
 0x199   :  { %v419_v38 = vadd.f32 %v418_v19, %v388_v54  ;;  %v1356_v54 = vld [vmem:[%s2386_s3 + $0x10] sm:$0xff] }
 0x19a   :  { %630 = vmatpush.bf16.msra.mxu1 %v1357_v11  ;;  %1376 = vmatpush.bf16.msrb.mxu3 %v1357_v11 }
 0x19b   :  { %v420_v40 = vadd.f32 %v419_v38, %v389_v60  ;;  %v1355_v38 = vld [vmem:[%s2386_s3 + $0x8] sm:$0xff] }
 0x19d   :  { %v421_v43 = vadd.f32 %v420_v40, %v390_v2  ;;  %v1354_v40 = vld [vmem:[%s2386_s3] sm:$0xff] }
 0x19e   :  { %631 = vmatpush.bf16.msra.mxu1 %v1356_v54  ;;  %1377 = vmatpush.bf16.msrb.mxu3 %v1356_v54 }
 0x19f   :  { %v422_v46 = vadd.f32 %v421_v43, %v391_v7 }
 0x1a1   :  { %v423_v49 = vadd.f32 %v422_v46, %v392_v44 }
 0x1a2   :  { %632 = vmatpush.bf16.msra.mxu1 %v1355_v38  ;;  %1378 = vmatpush.bf16.msrb.mxu3 %v1355_v38 }
 0x1a3   :  { %v424_v33 = vadd.f32 %v423_v49, %v393_v51  ;;  %v1849_v49 = vld [vmem:[%s2385_s2] sm:$0xf] }
 0x1a5   :  { %v425_v34 = vadd.f32 %v424_v33, %v394_v52 }
 0x1a6   :  { %633 = vmatpush.bf16.msra.mxu1 %v1354_v40  ;;  %1379 = vmatpush.bf16.msrb.mxu3 %v1354_v40 }
 0x1a7   :  { %v426_v35 = vadd.f32 %v425_v34, %v395_v62  ;;  %v1855_v34 = vperm.slane %v1849_v49, 1 }
 0x1a9   :  { %v427_v36 = vadd.f32 %v426_v35, %v396_v9 }
 0x1ab   :  { %v428_v55 = vadd.f32 %v427_v36, %v397_v4 }
 0x1ad   :  { %v429_v5 = vrot.slane %v428_v55, 4 }
 0x1af   :  { %v430_v8 = vadd.f32 %v429_v5, %v428_v55 }
 0x1b1   :  { %v431_v42 = vrot.slane %v430_v8, 2 }
 0x1b3   :  { %v432_v48 = vadd.f32 %v431_v42, %v430_v8 }
 0x1b5   :  { %v433_v15 = vrot.slane %v432_v48, 1 }
 0x1b7   :  { %v434_v19 = vadd.f32 %v433_v15, %v432_v48 }
 0x1b9   :  { %v435_v60 = vmul.f32 %v434_v19, %v1624_v53 }
 0x1bb   :  { %v436_v2 = vadd.f32 1e-05, %v435_v60 }
 0x1bd   :  { %1394 = vrsqrt.f32 %v436_v2  ;;  %vm443_vm3 = vweird.f32 %v436_v2 }
 0x1c3   :  { %v1395_v7 = vpop.eup %1394 }
 0x1c4   :  { %v438_v43 = vmul.f32 %v1395_v7, %v436_v2  ;;  %vm444_vm2 = vweird.f32 %v1395_v7 }
 0x1c5   :  { %vm445_vm4 = vmor %vm443_vm3, %vm444_vm2 }
 0x1c6   :  { %v439_v44 = vmul.f32 %v1395_v7, %v438_v43 }
 0x1c8   :  { %v440_v46 = vmul.f32 0.5, %v439_v44 }
 0x1ca   :  { %v441_v51 = vsub.f32 1.5, %v440_v46 }
 0x1cc   :  { %v442_v32 = vmul.f32 %v1395_v7, %v441_v51 }
 0x1ce   :  { %v446_v52 = vsel %vm445_vm4, %v1395_v7, %v442_v32 }
 0x1cf   :  { %v447_v33 = vmul.f32 %v446_v52, %v1849_v49 }
 0x1d1   :  { %v1852_v62 = vperm.slane %v447_v33, 0 }
 0x1d3   :  { %v449_v0 = vmul.f32 %v1852_v62, %v1631_v56  ;;  %v450_v9 = vmul.f32 %v1852_v62, %v1635_v57  ;;  %v473_v35 = vmul.f32 %v1852_v62, %v1771_v26  ;;  %v474_v4 = vmul.f32 %v1852_v62, %v1777_v27 }
 0x1d4   :  { %v451_v56 = vmul.f32 %v1852_v62, %v1639_v59  ;;  %v452_v57 = vmul.f32 %v1852_v62, %v1647_v63  ;;  %v475_v26 = vmul.f32 %v1852_v62, %v1783_v28  ;;  %v457_v11 = vmul.f32 %v1852_v62, %v1675_v10 }
 0x1d5   :  { %v506_v36 = vadd.f32 %v1855_v34, %v473_v35  ;;  %v507_v25 = vadd.f32 %v1855_v34, %v474_v4  ;;  %v482_v55 = vadd.f32 %v1855_v34, %v449_v0  ;;  %v483_v5 = vadd.f32 %v1855_v34, %v450_v9 }
 0x1d6   :  { %v458_v48 = vmul.f32 %v1852_v62, %v1681_v14  ;;  %v459_v15 = vmul.f32 %v1852_v62, %v1687_v18  ;;  %v476_v59 = vmul.f32 %v1852_v62, %v1789_v29  ;;  %v460_v63 = vmul.f32 %v1852_v62, %v1693_v22 }
 0x1d7   :  { %v539_v37 = vmax.f32 %v507_v25, 0.0  ;;  %v514_v8 = vmax.f32 %v482_v55, 0.0  ;;  %v515_v27 = vmax.f32 %v483_v5, 0.0  ;;  %v538_v42 = vmax.f32 %v506_v36, 0.0 }
 0x1d8   :  { %v461_v28 = vmul.f32 %v1852_v62, %v1699_v39  ;;  %v462_v10 = vmul.f32 %v1852_v62, %v1705_v41  ;;  %v463_v14 = vmul.f32 %v1852_v62, %v1711_v45  ;;  %v484_v60 = vadd.f32 %v1855_v34, %v451_v56 }
 0x1d9   :  { %v546_v54 = vpack.c.bf16 %v515_v27, %v514_v8  ;;  %v558_v19 = vpack.c.bf16 %v539_v37, %v538_v42  ;;  %v485_v18 = vadd.f32 %v1855_v34, %v452_v57  ;;  %v464_v29 = vmul.f32 %v1852_v62, %v1717_v47 }
 0x1da   :  { %v465_v22 = vmul.f32 %v1852_v62, %v1723_v50  ;;  %v508_v39 = vadd.f32 %v1855_v34, %v475_v26  ;;  %v466_v41 = vmul.f32 %v1852_v62, %v1729_v61  ;;  %v467_v45 = vmul.f32 %v1852_v62, %v1735_v13 }
 0x1db   :  { %634 = vmatmul.bf16.vlgmr.msra.gmra.mxu1 %v546_v54  ;;  %694 = vmatmul.bf16.vlgmr.msrb.gmra.mxu3 %v558_v19  ;;  %v468_v38 = vmul.f32 %v1852_v62, %v1741_v3  ;;  %v509_v2 = vadd.f32 %v1855_v34, %v476_v59  ;;  %v469_v47 = vmul.f32 %v1852_v62, %v1747_v20  ;;  %v516_v13 = vmax.f32 %v484_v60, 0.0 }
 0x1dc   :  { %v470_v50 = vmul.f32 %v1852_v62, %v1753_v21  ;;  %v471_v40 = vmul.f32 %v1852_v62, %v1759_v23  ;;  %v490_v7 = vadd.f32 %v1855_v34, %v457_v11  ;;  %v472_v61 = vmul.f32 %v1852_v62, %v1765_v24 }
 0x1dd   :  { %v517_v43 = vmax.f32 %v485_v18, 0.0  ;;  %v491_v3 = vadd.f32 %v1855_v34, %v458_v48  ;;  %v540_v44 = vmax.f32 %v508_v39, 0.0  ;;  %v492_v51 = vadd.f32 %v1855_v34, %v459_v15 }
 0x1de   :  { %v522_v46 = vmax.f32 %v490_v7, 0.0  ;;  %v493_v20 = vadd.f32 %v1855_v34, %v460_v63  ;;  %v541_v32 = vmax.f32 %v509_v2, 0.0  ;;  %v494_v52 = vadd.f32 %v1855_v34, %v461_v28 }
 0x1df   :  { %v523_v21 = vmax.f32 %v491_v3, 0.0  ;;  %v495_v23 = vadd.f32 %v1855_v34, %v462_v10  ;;  %v524_v33 = vmax.f32 %v492_v51, 0.0  ;;  %v496_v24 = vadd.f32 %v1855_v34, %v463_v14 }
 0x1e0   :  { %v525_v0 = vmax.f32 %v493_v20, 0.0  ;;  %v497_v9 = vadd.f32 %v1855_v34, %v464_v29  ;;  %v526_v4 = vmax.f32 %v494_v52, 0.0  ;;  %v498_v25 = vadd.f32 %v1855_v34, %v465_v22 }
 0x1e1   :  { %v1921_v35 = vpack.c.bf16 %v523_v21, %v522_v46  ;;  %v527_v36 = vmax.f32 %v495_v23, 0.0  ;;  %v528_v5 = vmax.f32 %v496_v24, 0.0  ;;  %v499_v57 = vadd.f32 %v1855_v34, %v466_v41 }
 0x1e2   :  { %v551_v55 = vpack.c.bf16 %v525_v0, %v524_v33  ;;  %v529_v56 = vmax.f32 %v497_v9, 0.0  ;;  %v530_v37 = vmax.f32 %v498_v25, 0.0  ;;  %v500_v8 = vadd.f32 %v1855_v34, %v467_v45 }
 0x1e3   :  { %v552_v26 = vpack.c.bf16 %v527_v36, %v526_v4  ;;  %v501_v27 = vadd.f32 %v1855_v34, %v468_v38  ;;  %v531_v11 = vmax.f32 %v499_v57, 0.0  ;;  %v502_v48 = vadd.f32 %v1855_v34, %v469_v47 }
 0x1e4   :  { %v553_v42 = vpack.c.bf16 %v529_v56, %v528_v5  ;;  %v503_v15 = vadd.f32 %v1855_v34, %v470_v50  ;;  %v532_v59 = vmax.f32 %v500_v8, 0.0  ;;  %v504_v28 = vadd.f32 %v1855_v34, %v471_v40 }
 0x1e5   :  { %v533_v63 = vmax.f32 %v501_v27, 0.0  ;;  %v505_v54 = vadd.f32 %v1855_v34, %v472_v61  ;;  %v554_v19 = vpack.c.bf16 %v531_v11, %v530_v37  ;;  %v534_v10 = vmax.f32 %v502_v48, 0.0 }
 0x1e6   :  { %v535_v14 = vmax.f32 %v503_v15, 0.0  ;;  %v536_v18 = vmax.f32 %v504_v28, 0.0  ;;  %v547_v22 = vpack.c.bf16 %v517_v43, %v516_v13  ;;  %v559_v39 = vpack.c.bf16 %v541_v32, %v540_v44 }
 0x1e7   :  { %v555_v60 = vpack.c.bf16 %v533_v63, %v532_v59  ;;  %v537_v29 = vmax.f32 %v505_v54, 0.0  ;;  %v453_v38 = vmul.f32 %v1852_v62, %v1651_v12  ;;  %v454_v2 = vmul.f32 %v1852_v62, %v1657_v16 }
 0x1e8   :  { %v556_v41 = vpack.c.bf16 %v535_v14, %v534_v10  ;;  %v477_v47 = vmul.f32 %v1852_v62, %v1795_v30  ;;  %v478_v50 = vmul.f32 %v1852_v62, %v1801_v31  ;;  %v480_v30 = vmul.f32 %v1852_v62, %v1816_v1 }
 0x1e9   :  { %v557_v45 = vpack.c.bf16 %v537_v29, %v536_v18  ;;  %v486_v40 = vadd.f32 %v1855_v34, %v453_v38  ;;  %v487_v7 = vadd.f32 %v1855_v34, %v454_v2  ;;  %v455_v31 = vmul.f32 %v1852_v62, %v1663_v17 }
 0x1ea   :  { %v510_v61 = vadd.f32 %v1855_v34, %v477_v47  ;;  %v511_v13 = vadd.f32 %v1855_v34, %v478_v50  ;;  %v456_v51 = vmul.f32 %v1852_v62, %v1669_v6  ;;  %v479_v20 = vmul.f32 %v1852_v62, %v1810_v58 }
 0x1eb   :  { %639 = vmatmul.bf16.gmra.mxu1 %v547_v22  ;;  %699 = vmatmul.bf16.gmra.mxu3 %v559_v39  ;;  %v518_v43 = vmax.f32 %v486_v40, 0.0  ;;  %v519_v3 = vmax.f32 %v487_v7, 0.0  ;;  %v488_v32 = vadd.f32 %v1855_v34, %v455_v31  ;;  %v513_v23 = vadd.f32 %v1855_v34, %v480_v30 }
 0x1ec   :  { %v542_v12 = vmax.f32 %v510_v61, 0.0  ;;  %v543_v44 = vmax.f32 %v511_v13, 0.0  ;;  %v489_v21 = vadd.f32 %v1855_v34, %v456_v51  ;;  %v512_v52 = vadd.f32 %v1855_v34, %v479_v20 }
 0x1ed   :  { %v548_v46 = vpack.c.bf16 %v519_v3, %v518_v43  ;;  %v520_v33 = vmax.f32 %v488_v32, 0.0  ;;  %v545_v24 = vmax.f32 %v513_v23, 0.0 }
 0x1ee   :  { %v560_v16 = vpack.c.bf16 %v543_v44, %v542_v12  ;;  %v521_v0 = vmax.f32 %v489_v21, 0.0  ;;  %v544_v1 = vmax.f32 %v512_v52, 0.0 }
 0x1f0   :  { %v549_v9 = vpack.c.bf16 %v521_v0, %v520_v33  ;;  %v561_v17 = vpack.c.bf16 %v545_v24, %v544_v1 }
 0x1fb   :  { %644 = vmatmul.bf16.gmra.mxu1 %v548_v46  ;;  %704 = vmatmul.bf16.gmra.mxu3 %v560_v16 }
 0x20b   :  { %649 = vmatmul.bf16.gmra.mxu1 %v549_v9  ;;  %709 = vmatmul.bf16.gmra.mxu3 %v561_v17 }
 0x21b   :  { %654 = vmatmul.bf16.gmra.mxu1 %v1921_v35 }
 0x22b   :  { %659 = vmatmul.bf16.gmra.mxu1 %v551_v55 }
 0x23b   :  { %664 = vmatmul.bf16.gmra.mxu1 %v552_v26 }
 0x24b   :  { %669 = vmatmul.bf16.gmra.mxu1 %v553_v42 }
 0x258   :  { %v1956_v6 = vpop.f32.mrf.mxu1 }
 0x25b   :  { %674 = vmatmul.bf16.gmra.mxu1 %v554_v19 }
 0x25e   :  { %v1990_v11 = vpop.f32.mrf.mxu3 }
 0x260   :  { %v1958_v58 = vpop.f32.mrf.mxu1 }
 0x261   :  { %v715_v59 = vadd.f32 %v1958_v58, %v1956_v6 }
 0x266   :  { %v1994_v15 = vpop.f32.mrf.mxu3 }
 0x268   :  { %v1960_v62 = vpop.f32.mrf.mxu1 }
 0x269   :  { %v716_v63 = vadd.f32 %v715_v59, %v1960_v62 }
 0x26b   :  { %679 = vmatmul.bf16.gmra.mxu1 %v555_v60 }
 0x26e   :  { %v2004_v14 = vpop.f32.mrf.mxu3 }
 0x270   :  { %v1962_v34 = vpop.f32.mrf.mxu1 }
 0x271   :  { %v717_v54 = vadd.f32 %v716_v63, %v1962_v34 }
 0x278   :  { %v1964_v4 = vpop.f32.mrf.mxu1 }
 0x279   :  { %v718_v19 = vadd.f32 %v717_v54, %v1964_v4 }
 0x27b   :  { %684 = vmatmul.bf16.gmra.mxu1 %v556_v41 }
 0x280   :  { %v1966_v36 = vpop.f32.mrf.mxu1 }
 0x281   :  { %v719_v10 = vadd.f32 %v718_v19, %v1966_v36 }
 0x288   :  { %v1968_v25 = vpop.f32.mrf.mxu1 }
 0x289   :  { %v720_v60 = vadd.f32 %v719_v10, %v1968_v25 }
 0x28b   :  { %689 = vmatmul.bf16.gmra.mxu1 %v557_v45  ;;  %v2013_v45 = vpop.f32.mrf.mxu3 }
 0x290   :  { %v1970_v35 = vpop.f32.mrf.mxu1 }
 0x291   :  { %v721_v29 = vadd.f32 %v720_v60, %v1970_v35 }
 0x293   :  { %v2024_v13 = vpop.f32.mrf.mxu3 }
 0x298   :  { %v1972_v55 = vpop.f32.mrf.mxu1 }
 0x299   :  { %v722_v22 = vadd.f32 %v721_v29, %v1972_v55 }
 0x29b   :  { %v2033_v30 = vpop.f32.mrf.mxu3 }
 0x2a0   :  { %v1974_v5 = vpop.f32.mrf.mxu1 }
 0x2a1   :  { %v723_v39 = vadd.f32 %v722_v22, %v1974_v5 }
 0x2a3   :  { %v2042_v23 = vpop.f32.mrf.mxu3 }
 0x2a8   :  { %v1976_v56 = vpop.f32.mrf.mxu1 }
 0x2a9   :  { %v724_v41 = vadd.f32 %v723_v39, %v1976_v56 }
 0x2ab   :  { %v2049_v17 = vpop.f32.mrf.mxu3 }
 0x2b0   :  { %v1978_v57 = vpop.f32.mrf.mxu1 }
 0x2b1   :  { %v725_v2 = vadd.f32 %v724_v41, %v1978_v57 }
 0x2b8   :  { %v1980_v26 = vpop.f32.mrf.mxu1 }
 0x2b9   :  { %v726_v47 = vadd.f32 %v725_v2, %v1980_v26 }
 0x2c0   :  { %v1982_v37 = vpop.f32.mrf.mxu1 }
 0x2c1   :  { %v727_v50 = vadd.f32 %v726_v47, %v1982_v37 }
 0x2c8   :  { %v1984_v8 = vpop.f32.mrf.mxu1 }
 0x2c9   :  { %v728_v40 = vadd.f32 %v727_v50, %v1984_v8 }
 0x2d0   :  { %v1986_v27 = vpop.f32.mrf.mxu1 }
 0x2d1   :  { %v729_v61 = vadd.f32 %v728_v40, %v1986_v27 }
 0x2d8   :  { %v1988_v42 = vpop.f32.mrf.mxu1 }
 0x2d9   :  { %v730_v43 = vadd.f32 %v729_v61, %v1988_v42 }
 0x2e0   :  { %v1992_v48 = vpop.f32.mrf.mxu1 }
 0x2e1   :  { %v731_v3 = vadd.f32 %v730_v43, %v1992_v48 }
 0x2e8   :  { %v1999_v28 = vpop.f32.mrf.mxu1 }
 0x2e9   :  { %v732_v12 = vadd.f32 %v731_v3, %v1999_v28 }
 0x2f0   :  { %v2007_v18 = vpop.f32.mrf.mxu1 }
 0x2f1   :  { %v733_v46 = vadd.f32 %v732_v12, %v2007_v18 }
 0x2f8   :  { %v2015_v38 = vpop.f32.mrf.mxu1 }
 0x2f9   :  { %v734_v16 = vadd.f32 %v733_v46, %v2015_v38 }
 0x300   :  { %v2021_v7 = vpop.f32.mrf.mxu1 }
 0x301   :  { %v735_v31 = vadd.f32 %v734_v16, %v2021_v7 }
 0x308   :  { %v2029_v44 = vpop.f32.mrf.mxu1 }
 0x309   :  { %v736_v51 = vadd.f32 %v735_v31, %v2029_v44 }
 0x310   :  { %v2037_v20 = vpop.f32.mrf.mxu1 }
 0x311   :  { %v737_v32 = vadd.f32 %v736_v51, %v2037_v20 }
 0x313   :  { %v738_v21 = vadd.f32 %v737_v32, %v1990_v11 }
 0x315   :  { %v739_v52 = vadd.f32 %v738_v21, %v1994_v15 }
 0x317   :  { %v740_v33 = vadd.f32 %v739_v52, %v2004_v14 }
 0x319   :  { %v741_v0 = vadd.f32 %v740_v33, %v2013_v45 }
 0x31b   :  { %v742_v1 = vadd.f32 %v741_v0, %v2024_v13 }
 0x31d   :  { %v743_v24 = vadd.f32 %v742_v1, %v2033_v30 }
 0x31f   :  { %v744_v9 = vadd.f32 %v743_v24, %v2042_v23 }
 0x321   :  { %v745_v59 = vadd.f32 %v744_v9, %v2049_v17 }
 0x323   :  { %v746_v63 = vrot.slane %v745_v59, 4 }
 0x325   :  { %v747_v54 = vadd.f32 %v746_v63, %v745_v59 }
 0x327   :  { %v748_v19 = vrot.slane %v747_v54, 2 }
 0x329   :  { %v749_v10 = vadd.f32 %v748_v19, %v747_v54 }
 0x32b   :  { %v750_v60 = vrot.slane %v749_v10, 1 }
 0x32d   :  { %v751_v29 = vadd.f32 %v750_v60, %v749_v10 }
 0x32f   :  { %v2053_v22 = vmul.f32 %v751_v29, %v1624_v53 }
 0x331   :  { %v2057_v39 = vsub.f32 %v1956_v6, %v2053_v22  ;;  %v2061_v41 = vsub.f32 %v1958_v58, %v2053_v22  ;;  %v2065_v2 = vsub.f32 %v1960_v62, %v2053_v22  ;;  %v2073_v40 = vsub.f32 %v1962_v34, %v2053_v22 }
 0x332   :  { %v2077_v6 = vsub.f32 %v1964_v4, %v2053_v22  ;;  %v2083_v62 = vsub.f32 %v1966_v36, %v2053_v22  ;;  %v2089_v34 = vsub.f32 %v1968_v25, %v2053_v22  ;;  %v2095_v46 = vsub.f32 %v1970_v35, %v2053_v22 }
 0x333   :  { %v785_v47 = vmul.f32 %v2057_v39, %v2057_v39  ;;  %v786_v50 = vmul.f32 %v2061_v41, %v2061_v41  ;;  %v787_v58 = vmul.f32 %v2065_v2, %v2065_v2  ;;  %v788_v43 = vmul.f32 %v2073_v40, %v2073_v40 }
 0x334   :  { %v789_v4 = vmul.f32 %v2077_v6, %v2077_v6  ;;  %v790_v36 = vmul.f32 %v2083_v62, %v2083_v62  ;;  %v2101_v31 = vsub.f32 %v1972_v55, %v2053_v22  ;;  %v791_v25 = vmul.f32 %v2089_v34, %v2089_v34 }
 0x335   :  { %v817_v61 = vadd.f32 %v786_v50, %v785_v47  ;;  %v2107_v32 = vsub.f32 %v1974_v5, %v2053_v22  ;;  %v792_v35 = vmul.f32 %v2095_v46, %v2095_v46  ;;  %v2113_v52 = vsub.f32 %v1976_v56, %v2053_v22 }
 0x336   :  { %v793_v55 = vmul.f32 %v2101_v31, %v2101_v31  ;;  %v2119_v0 = vsub.f32 %v1978_v57, %v2053_v22  ;;  %v2125_v24 = vsub.f32 %v1980_v26, %v2053_v22  ;;  %v2131_v59 = vsub.f32 %v1982_v37, %v2053_v22 }
 0x337   :  { %v818_v3 = vadd.f32 %v817_v61, %v787_v58  ;;  %v794_v5 = vmul.f32 %v2107_v32, %v2107_v32  ;;  %v795_v56 = vmul.f32 %v2113_v52, %v2113_v52  ;;  %v2137_v54 = vsub.f32 %v1984_v8, %v2053_v22 }
 0x338   :  { %v796_v57 = vmul.f32 %v2119_v0, %v2119_v0  ;;  %v797_v26 = vmul.f32 %v2125_v24, %v2125_v24  ;;  %v2143_v10 = vsub.f32 %v1986_v27, %v2053_v22  ;;  %v798_v37 = vmul.f32 %v2131_v59, %v2131_v59 }
 0x339   :  { %v819_v12 = vadd.f32 %v818_v3, %v788_v43  ;;  %v2149_v29 = vsub.f32 %v1988_v42, %v2053_v22  ;;  %v799_v8 = vmul.f32 %v2137_v54, %v2137_v54  ;;  %v2155_v50 = vsub.f32 %v1992_v48, %v2053_v22 }
 0x33a   :  { %v800_v27 = vmul.f32 %v2143_v10, %v2143_v10  ;;  %v2161_v61 = vsub.f32 %v1999_v28, %v2053_v22  ;;  %v2167_v3 = vsub.f32 %v2007_v18, %v2053_v22 }
 0x33b   :  { %v820_v16 = vadd.f32 %v819_v12, %v789_v4  ;;  %v801_v42 = vmul.f32 %v2149_v29, %v2149_v29  ;;  %v802_v48 = vmul.f32 %v2155_v50, %v2155_v50  ;;  %v2173_v12 = vsub.f32 %v2015_v38, %v2053_v22 }
 0x33c   :  { %v803_v28 = vmul.f32 %v2161_v61, %v2161_v61  ;;  %v804_v18 = vmul.f32 %v2167_v3, %v2167_v3 }
 0x33d   :  { %v821_v51 = vadd.f32 %v820_v16, %v790_v36  ;;  %v2179_v16 = vsub.f32 %v2021_v7, %v2053_v22  ;;  %v805_v38 = vmul.f32 %v2173_v12, %v2173_v12 }
 0x33f   :  { %v822_v21 = vadd.f32 %v821_v51, %v791_v25  ;;  %v2185_v51 = vsub.f32 %v2029_v44, %v2053_v22  ;;  %v806_v7 = vmul.f32 %v2179_v16, %v2179_v16 }
 0x341   :  { %v823_v33 = vadd.f32 %v822_v21, %v792_v35  ;;  %v2191_v21 = vsub.f32 %v2037_v20, %v2053_v22  ;;  %v807_v44 = vmul.f32 %v2185_v51, %v2185_v51 }
 0x343   :  { %v824_v1 = vadd.f32 %v823_v33, %v793_v55  ;;  %v2197_v33 = vsub.f32 %v1990_v11, %v2053_v22  ;;  %v808_v20 = vmul.f32 %v2191_v21, %v2191_v21 }
 0x345   :  { %v825_v9 = vadd.f32 %v824_v1, %v794_v5  ;;  %v2203_v1 = vsub.f32 %v1994_v15, %v2053_v22  ;;  %v809_v11 = vmul.f32 %v2197_v33, %v2197_v33 }
 0x347   :  { %v826_v63 = vadd.f32 %v825_v9, %v795_v56  ;;  %v2209_v9 = vsub.f32 %v2004_v14, %v2053_v22  ;;  %v810_v15 = vmul.f32 %v2203_v1, %v2203_v1 }
 0x349   :  { %v827_v19 = vadd.f32 %v826_v63, %v796_v57  ;;  %v2215_v63 = vsub.f32 %v2013_v45, %v2053_v22  ;;  %v811_v14 = vmul.f32 %v2209_v9, %v2209_v9 }
 0x34b   :  { %v828_v60 = vadd.f32 %v827_v19, %v797_v26  ;;  %v2221_v19 = vsub.f32 %v2024_v13, %v2053_v22  ;;  %v812_v45 = vmul.f32 %v2215_v63, %v2215_v63  ;;  %v2236_v13 = vsub.f32 %v2042_v23, %v2053_v22 }
 0x34d   :  { %v829_v47 = vadd.f32 %v828_v60, %v798_v37  ;;  %v2227_v60 = vsub.f32 %v2033_v30, %v2053_v22  ;;  %v2242_v30 = vsub.f32 %v2049_v17, %v2053_v22  ;;  %v815_v23 = vmul.f32 %v2236_v13, %v2236_v13  ;;  %v1367_v17 = vld [vmem:[%s2387_s4 + $0x28] sm:$0xff] }
 0x34f   :  { %v830_v58 = vadd.f32 %v829_v47, %v799_v8  ;;  %v1369_v47 = vld [vmem:[%s2387_s4 + $0x38] sm:$0xff] }
 0x350   :  { %1045 = vmatpush.bf16.msra.mxu2 %v1369_v47  ;;  %1380 = vmatpush.bf16.msra.mxu3 %v1369_v47 }
 0x351   :  { %v831_v43 = vadd.f32 %v830_v58, %v800_v27  ;;  %v813_v27 = vmul.f32 %v2221_v19, %v2221_v19 }
 0x353   :  { %v832_v4 = vadd.f32 %v831_v43, %v801_v42  ;;  %v814_v42 = vmul.f32 %v2227_v60, %v2227_v60 }
 0x355   :  { %v833_v36 = vadd.f32 %v832_v4, %v802_v48  ;;  %v1368_v48 = vld [vmem:[%s2387_s4 + $0x30] sm:$0xff] }
 0x356   :  { %1046 = vmatpush.bf16.msra.mxu2 %v1368_v48  ;;  %1381 = vmatpush.bf16.msra.mxu3 %v1368_v48 }
 0x357   :  { %v834_v25 = vadd.f32 %v833_v36, %v803_v28  ;;  %v816_v28 = vmul.f32 %v2242_v30, %v2242_v30 }
 0x359   :  { %v835_v35 = vadd.f32 %v834_v25, %v804_v18  ;;  %v1366_v25 = vld [vmem:[%s2387_s4 + $0x20] sm:$0xff] }
 0x35a   :  { %1047 = vmatpush.bf16.msra.mxu2 %v1367_v17  ;;  %1382 = vmatpush.bf16.msra.mxu3 %v1367_v17 }
 0x35b   :  { %v836_v55 = vadd.f32 %v835_v35, %v805_v38 }
 0x35d   :  { %v837_v5 = vadd.f32 %v836_v55, %v806_v7  ;;  %v1365_v7 = vld [vmem:[%s2387_s4 + $0x18] sm:$0xff] }
 0x35e   :  { %1048 = vmatpush.bf16.msra.mxu2 %v1366_v25  ;;  %1383 = vmatpush.bf16.msra.mxu3 %v1366_v25 }
 0x35f   :  { %v838_v56 = vadd.f32 %v837_v5, %v807_v44  ;;  %v1364_v5 = vld [vmem:[%s2387_s4 + $0x10] sm:$0xff] }
 0x361   :  { %v839_v57 = vadd.f32 %v838_v56, %v808_v20 }
 0x362   :  { %1049 = vmatpush.bf16.msra.mxu2 %v1365_v7  ;;  %1384 = vmatpush.bf16.msra.mxu3 %v1365_v7 }
 0x363   :  { %v840_v26 = vadd.f32 %v839_v57, %v809_v11  ;;  %v1363_v11 = vld [vmem:[%s2387_s4 + $0x8] sm:$0xff] }
 0x365   :  { %v841_v37 = vadd.f32 %v840_v26, %v810_v15  ;;  %v1362_v15 = vld [vmem:[%s2387_s4] sm:$0xff]  ;;  %s1425_s4 = smov [#allocation2]  }
 0x366   :  { %1050 = vmatpush.bf16.msra.mxu2 %v1364_v5  ;;  %1385 = vmatpush.bf16.msra.mxu3 %v1364_v5  ;;  %s1170_s6 = sshll.u32 %s1425_s4, 4  ;;  %s1171_s6 = int_to_ptr.vmem [resolvable:$true] %s1170_s6 }
 0x367   :  { %v842_v8 = vadd.f32 %v841_v37, %v811_v14 }
 0x369   :  { %v843_v58 = vadd.f32 %v842_v8, %v812_v45 }
 0x36a   :  { %1051 = vmatpush.bf16.msra.mxu2 %v1363_v11  ;;  %1386 = vmatpush.bf16.msra.mxu3 %v1363_v11 }
 0x36b   :  { %v844_v43 = vadd.f32 %v843_v58, %v813_v27 }
 0x36d   :  { %v845_v4 = vadd.f32 %v844_v43, %v814_v42  ;;  %v2276_v42 = vperm.slane %v1849_v49, 3 }
 0x36e   :  { %1052 = vmatpush.bf16.msra.mxu2 %v1362_v15  ;;  %1387 = vmatpush.bf16.msra.mxu3 %v1362_v15 }
 0x36f   :  { %v846_v36 = vadd.f32 %v845_v4, %v815_v23 }
 0x371   :  { %v847_v22 = vadd.f32 %v846_v36, %v816_v28 }
 0x373   :  { %v848_v18 = vrot.slane %v847_v22, 4 }
 0x375   :  { %v849_v38 = vadd.f32 %v848_v18, %v847_v22 }
 0x377   :  { %v850_v35 = vrot.slane %v849_v38, 2 }
 0x379   :  { %v851_v55 = vadd.f32 %v850_v35, %v849_v38 }
 0x37b   :  { %v852_v44 = vrot.slane %v851_v55, 1 }
 0x37d   :  { %v853_v20 = vadd.f32 %v852_v44, %v851_v55 }
 0x37f   :  { %v854_v56 = vmul.f32 %v853_v20, %v1624_v53 }
 0x381   :  { %v855_v57 = vadd.f32 1e-05, %v854_v56 }
 0x383   :  { %1396 = vrsqrt.f32 %v855_v57  ;;  %vm862_vm6 = vweird.f32 %v855_v57 }
 0x389   :  { %v1397_v26 = vpop.eup %1396 }
 0x38a   :  { %v857_v14 = vmul.f32 %v1397_v26, %v855_v57  ;;  %vm863_vm5 = vweird.f32 %v1397_v26 }
 0x38b   :  { %vm864_vm7 = vmor %vm862_vm6, %vm863_vm5 }
 0x38c   :  { %v858_v37 = vmul.f32 %v1397_v26, %v857_v14 }
 0x38e   :  { %v859_v45 = vmul.f32 0.5, %v858_v37 }
 0x390   :  { %v860_v8 = vsub.f32 1.5, %v859_v45 }
 0x392   :  { %v861_v53 = vmul.f32 %v1397_v26, %v860_v8 }
 0x394   :  { %v865_v47 = vsel %vm864_vm7, %v1397_v26, %v861_v53 }
 0x395   :  { %v866_v27 = vmul.f32 %v865_v47, %v1849_v49 }
 0x397   :  { %v2273_v58 = vperm.slane %v866_v27, 2 }
 0x399   :  { %v868_v43 = vmul.f32 %v2273_v58, %v2057_v39  ;;  %v869_v48 = vmul.f32 %v2273_v58, %v2061_v41  ;;  %v892_v23 = vmul.f32 %v2273_v58, %v2197_v33  ;;  %v893_v4 = vmul.f32 %v2273_v58, %v2203_v1 }
 0x39a   :  { %v870_v39 = vmul.f32 %v2273_v58, %v2065_v2  ;;  %v871_v41 = vmul.f32 %v2273_v58, %v2073_v40  ;;  %v894_v33 = vmul.f32 %v2273_v58, %v2209_v9  ;;  %v891_v38 = vmul.f32 %v2273_v58, %v2191_v21 }
 0x39b   :  { %v925_v28 = vadd.f32 %v2276_v42, %v892_v23  ;;  %v926_v36 = vadd.f32 %v2276_v42, %v893_v4  ;;  %v901_v17 = vadd.f32 %v2276_v42, %v868_v43  ;;  %v902_v49 = vadd.f32 %v2276_v42, %v869_v48 }
 0x39c   :  { %v876_v35 = vmul.f32 %v2273_v58, %v2101_v31  ;;  %v877_v7 = vmul.f32 %v2273_v58, %v2107_v32  ;;  %v895_v2 = vmul.f32 %v2273_v58, %v2215_v63  ;;  %v878_v40 = vmul.f32 %v2273_v58, %v2113_v52 }
 0x39d   :  { %v957_v22 = vmax.f32 %v925_v28, 0.0  ;;  %v958_v18 = vmax.f32 %v926_v36, 0.0  ;;  %v933_v1 = vmax.f32 %v901_v17, 0.0  ;;  %v934_v25 = vmax.f32 %v902_v49, 0.0 }
 0x39e   :  { %v879_v9 = vmul.f32 %v2273_v58, %v2119_v0  ;;  %v880_v21 = vmul.f32 %v2273_v58, %v2125_v24  ;;  %v881_v31 = vmul.f32 %v2273_v58, %v2131_v59  ;;  %v903_v5 = vadd.f32 %v2276_v42, %v870_v39 }
 0x39f   :  { %v965_v55 = vpack.c.bf16 %v934_v25, %v933_v1  ;;  %v977_v44 = vpack.c.bf16 %v958_v18, %v957_v22  ;;  %v904_v32 = vadd.f32 %v2276_v42, %v871_v41  ;;  %v882_v63 = vmul.f32 %v2273_v58, %v2137_v54 }
 0x3a0   :  { %v883_v52 = vmul.f32 %v2273_v58, %v2143_v10  ;;  %v927_v0 = vadd.f32 %v2276_v42, %v894_v33  ;;  %v884_v24 = vmul.f32 %v2273_v58, %v2149_v29  ;;  %v885_v59 = vmul.f32 %v2273_v58, %v2155_v50 }
 0x3a1   :  { %1053 = vmatmul.bf16.vlgmr.msra.gmra.mxu2 %v965_v55  ;;  %1113 = vmatmul.bf16.vlgmr.msra.gmra.mxu3 %v977_v44  ;;  %v886_v20 = vmul.f32 %v2273_v58, %v2161_v61  ;;  %v928_v56 = vadd.f32 %v2276_v42, %v895_v2  ;;  %v887_v54 = vmul.f32 %v2273_v58, %v2167_v3  ;;  %v935_v50 = vmax.f32 %v903_v5, 0.0 }
 0x3a2   :  { %v888_v10 = vmul.f32 %v2273_v58, %v2173_v12  ;;  %v889_v11 = vmul.f32 %v2273_v58, %v2179_v16  ;;  %v909_v57 = vadd.f32 %v2276_v42, %v876_v35  ;;  %v890_v29 = vmul.f32 %v2273_v58, %v2185_v51 }
 0x3a3   :  { %v936_v15 = vmax.f32 %v904_v32, 0.0  ;;  %v910_v61 = vadd.f32 %v2276_v42, %v877_v7  ;;  %v959_v26 = vmax.f32 %v927_v0, 0.0  ;;  %v911_v37 = vadd.f32 %v2276_v42, %v878_v40 }
 0x3a4   :  { %v941_v14 = vmax.f32 %v909_v57, 0.0  ;;  %v912_v3 = vadd.f32 %v2276_v42, %v879_v9  ;;  %v960_v45 = vmax.f32 %v928_v56, 0.0  ;;  %v913_v8 = vadd.f32 %v2276_v42, %v880_v21 }
 0x3a5   :  { %v942_v12 = vmax.f32 %v910_v61, 0.0  ;;  %v914_v16 = vadd.f32 %v2276_v42, %v881_v31  ;;  %v943_v53 = vmax.f32 %v911_v37, 0.0  ;;  %v915_v51 = vadd.f32 %v2276_v42, %v882_v63 }
 0x3a6   :  { %v944_v47 = vmax.f32 %v912_v3, 0.0  ;;  %v916_v27 = vadd.f32 %v2276_v42, %v883_v52  ;;  %v945_v48 = vmax.f32 %v913_v8, 0.0  ;;  %v917_v4 = vadd.f32 %v2276_v42, %v884_v24 }
 0x3a7   :  { %v2342_v43 = vpack.c.bf16 %v942_v12, %v941_v14  ;;  %v946_v23 = vmax.f32 %v914_v16, 0.0  ;;  %v947_v36 = vmax.f32 %v915_v51, 0.0  ;;  %v918_v49 = vadd.f32 %v2276_v42, %v885_v59 }
 0x3a8   :  { %v970_v28 = vpack.c.bf16 %v944_v47, %v943_v53  ;;  %v948_v17 = vmax.f32 %v916_v27, 0.0  ;;  %v949_v41 = vmax.f32 %v917_v4, 0.0  ;;  %v919_v33 = vadd.f32 %v2276_v42, %v886_v20 }
 0x3a9   :  { %v971_v39 = vpack.c.bf16 %v946_v23, %v945_v48  ;;  %v920_v22 = vadd.f32 %v2276_v42, %v887_v54  ;;  %v950_v1 = vmax.f32 %v918_v49, 0.0  ;;  %v921_v25 = vadd.f32 %v2276_v42, %v888_v10 }
 0x3aa   :  { %v972_v18 = vpack.c.bf16 %v948_v17, %v947_v36  ;;  %v922_v35 = vadd.f32 %v2276_v42, %v889_v11  ;;  %v951_v7 = vmax.f32 %v919_v33, 0.0  ;;  %v923_v40 = vadd.f32 %v2276_v42, %v890_v29 }
 0x3ab   :  { %v952_v2 = vmax.f32 %v920_v22, 0.0  ;;  %v924_v9 = vadd.f32 %v2276_v42, %v891_v38  ;;  %v973_v55 = vpack.c.bf16 %v950_v1, %v949_v41  ;;  %v953_v44 = vmax.f32 %v921_v25, 0.0 }
 0x3ac   :  { %v954_v21 = vmax.f32 %v922_v35, 0.0  ;;  %v955_v5 = vmax.f32 %v923_v40, 0.0  ;;  %v966_v63 = vpack.c.bf16 %v936_v15, %v935_v50  ;;  %v978_v52 = vpack.c.bf16 %v960_v45, %v959_v26 }
 0x3ad   :  { %v974_v31 = vpack.c.bf16 %v952_v2, %v951_v7  ;;  %v956_v32 = vmax.f32 %v924_v9, 0.0  ;;  %v872_v59 = vmul.f32 %v2273_v58, %v2077_v6  ;;  %v873_v20 = vmul.f32 %v2273_v58, %v2083_v62 }
 0x3ae   :  { %v975_v0 = vpack.c.bf16 %v954_v21, %v953_v44  ;;  %v896_v38 = vmul.f32 %v2273_v58, %v2221_v19  ;;  %v897_v56 = vmul.f32 %v2273_v58, %v2227_v60  ;;  %v874_v19 = vmul.f32 %v2273_v58, %v2089_v34 }
 0x3af   :  { %v2352_v24 = vpack.c.bf16 %v956_v32, %v955_v5  ;;  %v905_v54 = vadd.f32 %v2276_v42, %v872_v59  ;;  %v906_v10 = vadd.f32 %v2276_v42, %v873_v20  ;;  %v875_v60 = vmul.f32 %v2273_v58, %v2095_v46 }
 0x3b0   :  { %v929_v11 = vadd.f32 %v2276_v42, %v896_v38  ;;  %v930_v57 = vadd.f32 %v2276_v42, %v897_v56  ;;  %v898_v26 = vmul.f32 %v2273_v58, %v2236_v13  ;;  %v899_v14 = vmul.f32 %v2273_v58, %v2242_v30 }
 0x3b1   :  { %1058 = vmatmul.bf16.gmra.mxu2 %v966_v63  ;;  %1118 = vmatmul.bf16.gmra.mxu3 %v978_v52  ;;  %v937_v29 = vmax.f32 %v905_v54, 0.0  ;;  %v938_v50 = vmax.f32 %v906_v10, 0.0  ;;  %v907_v37 = vadd.f32 %v2276_v42, %v874_v19  ;;  %v908_v3 = vadd.f32 %v2276_v42, %v875_v60 }
 0x3b2   :  { %v961_v6 = vmax.f32 %v929_v11, 0.0  ;;  %v962_v15 = vmax.f32 %v930_v57, 0.0  ;;  %v931_v45 = vadd.f32 %v2276_v42, %v898_v26  ;;  %v932_v12 = vadd.f32 %v2276_v42, %v899_v14 }
 0x3b3   :  { %v967_v61 = vpack.c.bf16 %v938_v50, %v937_v29  ;;  %v939_v8 = vmax.f32 %v907_v37, 0.0  ;;  %v940_v16 = vmax.f32 %v908_v3, 0.0 }
 0x3b4   :  { %v979_v62 = vpack.c.bf16 %v962_v15, %v961_v6  ;;  %v963_v34 = vmax.f32 %v931_v45, 0.0  ;;  %v964_v53 = vmax.f32 %v932_v12, 0.0 }
 0x3b5   :  { %v968_v47 = vpack.c.bf16 %v940_v16, %v939_v8 }
 0x3b6   :  { %v980_v46 = vpack.c.bf16 %v964_v53, %v963_v34 }
 0x3c1   :  { %1063 = vmatmul.bf16.gmra.mxu2 %v967_v61  ;;  %1123 = vmatmul.bf16.gmra.mxu3 %v979_v62 }
 0x3d1   :  { %1068 = vmatmul.bf16.gmra.mxu2 %v968_v47  ;;  %1128 = vmatmul.bf16.gmra.mxu3 %v980_v46 }
 0x3e1   :  { %1073 = vmatmul.bf16.gmra.mxu2 %v2342_v43 }
 0x3f1   :  { %1078 = vmatmul.bf16.gmra.mxu2 %v970_v28 }
 0x401   :  { %1083 = vmatmul.bf16.gmra.mxu2 %v971_v39 }
 0x411   :  { %1088 = vmatmul.bf16.gmra.mxu2 %v972_v18 }
 0x421   :  { %1093 = vmatmul.bf16.gmra.mxu2 %v973_v55 }
 0x424   :  { %v1054_v13 = vpop.f32.mrf.mxu2  ;;  %v1114_v30 = vpop.f32.mrf.mxu3 }
 0x425   :  { %1134 = vst [vmem:[#allocation2] sm:$0xff] %v1054_v13 }
 0x426   :  { %1158 = vst [vmem:[#allocation2 + $0xc0] sm:$0xff] %v1114_v30 }
 0x42c   :  { %v1056_v58 = vpop.f32.mrf.mxu2  ;;  %v1116_v42 = vpop.f32.mrf.mxu3 }
 0x42d   :  { %1135 = vst [vmem:[#allocation2 + $0x8] sm:$0xff] %v1056_v58 }
 0x42e   :  { %1159 = vst [vmem:[#allocation2 + $0xc8] sm:$0xff] %v1116_v42 }
 0x431   :  { %1098 = vmatmul.bf16.gmra.mxu2 %v974_v31 }
 0x434   :  { %v1059_v51 = vpop.f32.mrf.mxu2  ;;  %v1119_v27 = vpop.f32.mrf.mxu3 }
 0x435   :  { %1136 = vst [vmem:[#allocation2 + $0x10] sm:$0xff] %v1059_v51 }
 0x436   :  { %1160 = vst [vmem:[#allocation2 + $0xd0] sm:$0xff] %v1119_v27 }
 0x43c   :  { %v1061_v48 = vpop.f32.mrf.mxu2  ;;  %v1121_v23 = vpop.f32.mrf.mxu3 }
 0x43d   :  { %1137 = vst [vmem:[#allocation2 + $0x18] sm:$0xff] %v1061_v48 }
 0x43e   :  { %1161 = vst [vmem:[#allocation2 + $0xd8] sm:$0xff] %v1121_v23 }
 0x441   :  { %1103 = vmatmul.bf16.gmra.mxu2 %v975_v0 }
 0x444   :  { %v1064_v43 = vpop.f32.mrf.mxu2  ;;  %v1124_v4 = vpop.f32.mrf.mxu3 }
 0x445   :  { %1138 = vst [vmem:[#allocation2 + $0x20] sm:$0xff] %v1064_v43 }
 0x446   :  { %1162 = vst [vmem:[#allocation2 + $0xe0] sm:$0xff] %v1124_v4 }
 0x44c   :  { %v1066_v28 = vpop.f32.mrf.mxu2  ;;  %v1126_v36 = vpop.f32.mrf.mxu3 }
 0x44d   :  { %1139 = vst [vmem:[#allocation2 + $0x28] sm:$0xff] %v1066_v28 }
 0x44e   :  { %1163 = vst [vmem:[#allocation2 + $0xe8] sm:$0xff] %v1126_v36 }
 0x451   :  { %1108 = vmatmul.bf16.gmra.mxu2 %v2352_v24 }
 0x454   :  { %v1069_v17 = vpop.f32.mrf.mxu2  ;;  %v1129_v49 = vpop.f32.mrf.mxu3 }
 0x455   :  { %1140 = vst [vmem:[#allocation2 + $0x30] sm:$0xff] %v1069_v17 }
 0x456   :  { %1164 = vst [vmem:[#allocation2 + $0xf0] sm:$0xff] %v1129_v49 }
 0x45c   :  { %v1071_v39 = vpop.f32.mrf.mxu2  ;;  %v1131_v41 = vpop.f32.mrf.mxu3 }
 0x45d   :  { %1141 = vst [vmem:[#allocation2 + $0x38] sm:$0xff] %v1071_v39 }
 0x45e   :  { %1165 = vst [vmem:[#allocation2 + $0xf8] sm:$0xff] %v1131_v41 }
 0x464   :  { %v1074_v33 = vpop.f32.mrf.mxu2 }
 0x465   :  { %1142 = vst [vmem:[#allocation2 + $0x40] sm:$0xff] %v1074_v33 }
 0x46c   :  { %v1076_v22 = vpop.f32.mrf.mxu2 }
 0x46d   :  { %1143 = vst [vmem:[#allocation2 + $0x48] sm:$0xff] %v1076_v22 }
 0x474   :  { %v1079_v18 = vpop.f32.mrf.mxu2 }
 0x475   :  { %1144 = vst [vmem:[#allocation2 + $0x50] sm:$0xff] %v1079_v18 }
 0x47c   :  { %v1081_v1 = vpop.f32.mrf.mxu2 }
 0x47d   :  { %1145 = vst [vmem:[#allocation2 + $0x58] sm:$0xff] %v1081_v1 }
 0x484   :  { %v1084_v25 = vpop.f32.mrf.mxu2 }
 0x485   :  { %1146 = vst [vmem:[#allocation2 + $0x60] sm:$0xff] %v1084_v25 }
 0x48c   :  { %v1086_v35 = vpop.f32.mrf.mxu2 }
 0x48d   :  { %1147 = vst [vmem:[#allocation2 + $0x68] sm:$0xff] %v1086_v35 }
 0x494   :  { %v1089_v7 = vpop.f32.mrf.mxu2 }
 0x495   :  { %1148 = vst [vmem:[#allocation2 + $0x70] sm:$0xff] %v1089_v7 }
 0x49c   :  { %v1091_v2 = vpop.f32.mrf.mxu2 }
 0x49d   :  { %1149 = vst [vmem:[#allocation2 + $0x78] sm:$0xff] %v1091_v2 }
 0x4a4   :  { %v1094_v40 = vpop.f32.mrf.mxu2 }
 0x4a5   :  { %1150 = vst [vmem:[#allocation2 + $0x80] sm:$0xff] %v1094_v40 }
 0x4ac   :  { %v1096_v9 = vpop.f32.mrf.mxu2 }
 0x4ad   :  { %1151 = vst [vmem:[#allocation2 + $0x88] sm:$0xff] %v1096_v9 }
 0x4b4   :  { %v1099_v55 = vpop.f32.mrf.mxu2 }
 0x4b5   :  { %1152 = vst [vmem:[#allocation2 + $0x90] sm:$0xff] %v1099_v55 }
 0x4bc   :  { %v1101_v44 = vpop.f32.mrf.mxu2 }
 0x4bd   :  { %1153 = vst [vmem:[#allocation2 + $0x98] sm:$0xff] %v1101_v44 }
 0x4c4   :  { %v1104_v21 = vpop.f32.mrf.mxu2 }
 0x4c5   :  { %1154 = vst [vmem:[#allocation2 + $0xa0] sm:$0xff] %v1104_v21 }
 0x4cc   :  { %v1106_v31 = vpop.f32.mrf.mxu2 }
 0x4cd   :  { %1155 = vst [vmem:[#allocation2 + $0xa8] sm:$0xff] %v1106_v31 }
 0x4d4   :  { %v1109_v5 = vpop.f32.mrf.mxu2 }
 0x4d5   :  { %1156 = vst [vmem:[#allocation2 + $0xb0] sm:$0xff] %v1109_v5 }
 0x4dc   :  { %v1111_v32 = vpop.f32.mrf.mxu2 }
 0x4dd   :  { %1157 = vst [vmem:[#allocation2 + $0xb8] sm:$0xff] %v1111_v32 }
 0x4de   :  { %1178 = dma.vmem_to_hbm [thread:$0]  %s1171_s6, 4096, %s1173_s9, [#allocation3], %s1426_s10, %s1426_s10, %s1427_s11  }
 0x4df   :  { %1422 = dma.done.wait [#allocation3], 4096  }
 0x4e0   :  { %1423 = vsyncadd [#allocation3], 4294963200 }
 0x4e1   :  { %1183 = vsyncpa [#allocation3], 1 }

</bundles_post_ra>
